<compile_context>
chip_gen: v7x
topology: tpu7x:2x2x1
jax: 0.10.0
libtpu: 0.0.40
codegen_flags: <defaults>
</compile_context>

<pallas_src>
import jax
import jax.numpy as jnp
from jax.experimental import pallas as pl
from jax.experimental.pallas import tpu as pltpu

_VMEM_LIMIT = 48 * 1024 * 1024   # below v7x's 64 MiB physical, above default scoped


# ----------------------------- Pallas kernels -------------------------------

def _conv_relu_kernel(w_ref, p_ref, b_ref, o_ref):
    # Weight-stationary conv-as-matmul:  relu(W @ patches + b), lane = pixels.
    acc = jnp.dot(w_ref[...], p_ref[...], preferred_element_type=jnp.float32)
    o_ref[...] = jnp.maximum(acc + b_ref[...], 0.0)


def _gfm_pipeline_kernel(x_ref,
                         w1, s1, t1,
                         w2, s2, t2,
                         w3, s3, t3,
                         o_ref):
    # x_ref block: (1, in_ch, TILE_P)  -> channel-major pixel tile.
    h = x_ref[0]                                  # [in_ch, TILE_P]

    def stage(h, w, s, t):
        # feat = W @ h ; out = relu(feat * scale' + shift')  (bias & "+feat"
        # pre-folded into scale'/shift' in the wrapper).
        feat = jnp.dot(w[...], h, preferred_element_type=jnp.float32)
        return jnp.maximum(feat * s[0] + t[0], 0.0)

    h = stage(h, w1, s1, t1)
    h = stage(h, w2, s2, t2)
    h = stage(h, w3, s3, t3)
    o_ref[0] = h


# ----------------------------- wrappers --------------------------------------

def conv2d_relu_pallas(x_nchw, w_oihw, b, stride, pad, tile_p=1024):
    """Strided Conv2d + bias + ReLU: im2col in [K, P] layout + tiled Pallas matmul."""
    N, C, H, W = x_nchw.shape
    Cout, _, kh, kw = w_oihw.shape
    Hout = (H + 2 * pad - kh) // stride + 1
    Wout = (W + 2 * pad - kw) // stride + 1
    P = N * Hout * Wout
    K = C * kh * kw

    # im2col, directly in [K, P] (pixels on the last / lane axis).
    # TODO(synk): for very large inputs, replace this XLA-glue im2col with an
    # in-kernel tap loop (or lax.conv) to avoid the kh*kw read amplification.
    xp = jnp.pad(x_nchw, ((0, 0), (0, 0), (pad, pad), (pad, pad)))
    taps = []
    for i in range(kh):
        for j in range(kw):
            taps.append(xp[:, :,
                           i:i + stride * (Hout - 1) + 1:stride,
                           j:j + stride * (Wout - 1) + 1:stride])  # [N,C,Ho,Wo]
    pat = jnp.stack(taps, axis=2)                       # [N, C, kh*kw, Ho, Wo]
    pat = pat.transpose(1, 2, 0, 3, 4).reshape(K, P)    # [K, P]  (K order = C,kh,kw)

    # Tile the pixel axis; pad P up to a multiple of the tile.
    P128 = pl.cdiv(P, 128) * 128
    tile = min(tile_p, P128)
    Ppad = pl.cdiv(P, tile) * tile
    if Ppad != P:
        pat = jnp.pad(pat, ((0, 0), (0, Ppad - P)))

    wm = w_oihw.reshape(Cout, K)      # [Cout, K] -- matches pat's K ordering
    bm = b.reshape(Cout, 1)

    out = pl.pallas_call(
        _conv_relu_kernel,
        out_shape=jax.ShapeDtypeStruct((Cout, Ppad), jnp.float32),
        grid=(Ppad // tile,),
        in_specs=[pl.BlockSpec((Cout, K), lambda i: (0, 0)),
                  pl.BlockSpec((K, tile), lambda i: (0, i)),
                  pl.BlockSpec((Cout, 1), lambda i: (0, 0))],
        out_specs=pl.BlockSpec((Cout, tile), lambda i: (0, i)),
        compiler_params=pltpu.CompilerParams(
            dimension_semantics=("parallel",),
            vmem_limit_bytes=_VMEM_LIMIT),
    )(wm, pat, bm)

    out = out[:, :P].reshape(Cout, N, Hout, Wout).transpose(1, 0, 2, 3)  # NCHW
    return out


def gfm_pipeline_pallas(x_nchw, cond, params, tile_p=2048):
    """Fused gfm1 -> gfm2 -> gfm3, channel-major, pixel-axis tiled.

    x_nchw: [N, C, H, W], cond: [N, cond_nf].
    """
    N, C, H, W = x_nchw.shape
    HW = H * W

    HW128 = pl.cdiv(HW, 128) * 128
    tile = min(tile_p, HW128)
    HWp = pl.cdiv(HW, tile) * tile

    x_cm = x_nchw.reshape(N, C, HW)          # free reshape: NCHW -> channel-major
    if HWp != HW:
        x_cm = jnp.pad(x_cm, ((0, 0), (0, 0), (0, HWp - HW)))

    # Hoist FiLM conditioning (tiny [N, cond_nf] @ [cond_nf, nf] matmuls) out of
    # the kernel and fold conv bias + the "+ feat" term:
    #   out = feat*scale + shift + feat = (Wx)*(scale+1) + (b*(scale+1) + shift)
    weights, scales, shifts = [], [], []
    for g in (params['gfm1'], params['gfm2'], params['gfm3']):
        scale = cond @ g['scale_w'].T + g['scale_b'] + 1.0        # [N, nf]
        shift = cond @ g['shift_w'].T + g['shift_b']              # [N, nf]
        shift2 = g['conv_b'][None, :] * scale + shift             # [N, nf]
        weights.append(g['conv_w'])                               # [nf, in_nf]
        scales.append(scale[:, :, None])                          # [N, nf, 1]
        shifts.append(shift2[:, :, None])                         # [N, nf, 1]

    out_ch = weights[-1].shape[0]

    def w_spec(w):
        return pl.BlockSpec(w.shape, lambda n, p: (0, 0))

    def v_spec(v):
        return pl.BlockSpec((1, v.shape[1], 1), lambda n, p: (n, 0, 0))

    flat = []
    in_specs = [pl.BlockSpec((1, C, tile), lambda n, p: (n, 0, p))]
    for w, s, t in zip(weights, scales, shifts):
        flat += [w, s, t]
        in_specs += [w_spec(w), v_spec(s), v_spec(t)]

    out = pl.pallas_call(
        _gfm_pipeline_kernel,
        out_shape=jax.ShapeDtypeStruct((N, out_ch, HWp), jnp.float32),
        grid=(N, HWp // tile),
        in_specs=in_specs,
        out_specs=pl.BlockSpec((1, out_ch, tile), lambda n, p: (n, 0, p)),
        compiler_params=pltpu.CompilerParams(
            dimension_semantics=("parallel", "parallel"),
            vmem_limit_bytes=_VMEM_LIMIT),
    )(x_cm, *flat)

    return out[:, :, :HW].reshape(N, out_ch, H, W)     # already NCHW, free reshape


# ----------------------------- model ----------------------------------------

def init_params(key, in_ch=3, out_ch=3, base_nf=64, cond_nf=32):
    keys = iter(jax.random.split(key, 64))

    def conv_w(o, i, k):
        return jax.random.normal(next(keys), (o, i, k, k), jnp.float32) * 0.05

    def vec(o):
        return jax.random.normal(next(keys), (o,), jnp.float32) * 0.05

    def gfm(c_nf, i_nf, nf):
        return dict(
            conv_w=jax.random.normal(next(keys), (nf, i_nf), jnp.float32) * 0.05,
            conv_b=vec(nf),
            scale_w=jax.random.normal(next(keys), (nf, c_nf), jnp.float32) * 0.05,
            scale_b=vec(nf),
            shift_w=jax.random.normal(next(keys), (nf, c_nf), jnp.float32) * 0.05,
            shift_b=vec(nf))

    p = {}
    p['c1w'] = conv_w(cond_nf, in_ch, 7);   p['c1b'] = vec(cond_nf)
    p['c2w'] = conv_w(cond_nf, cond_nf, 3); p['c2b'] = vec(cond_nf)
    p['c3w'] = conv_w(cond_nf, cond_nf, 3); p['c3b'] = vec(cond_nf)
    p['gfm1'] = gfm(cond_nf, in_ch, base_nf)
    p['gfm2'] = gfm(cond_nf, base_nf, base_nf)
    p['gfm3'] = gfm(cond_nf, base_nf, out_ch)
    return p


def csrnet_forward(x_nchw, params):
    # ConditionNet: 3 strided conv+ReLU (Pallas) then adaptive avg pool to 1x1.
    h = conv2d_relu_pallas(x_nchw, params['c1w'], params['c1b'], stride=2, pad=1)
    h = conv2d_relu_pallas(h, params['c2w'], params['c2b'], stride=2, pad=1)
    h = conv2d_relu_pallas(h, params['c3w'], params['c3b'], stride=2, pad=1)
    cond = h.mean(axis=(2, 3))       # AdaptiveAvgPool2d(1) -> [N, cond_nf] (tiny)

    # Fused GFM pipeline, channel-major + tiled.
    return gfm_pipeline_pallas(x_nchw, cond, params)


# ----------------------------- pure-JAX reference ----------------------------

def csrnet_reference(x, params):
    def conv(x, w, b, s, p):
        y = jax.lax.conv_general_dilated(
            x, w, (s, s), [(p, p), (p, p)],
            dimension_numbers=('NCHW', 'OIHW', 'NCHW'))
        return y + b[None, :, None, None]

    h = jax.nn.relu(conv(x, params['c1w'], params['c1b'], 2, 1))
    h = jax.nn.relu(conv(h, params['c2w'], params['c2b'], 2, 1))
    h = jax.nn.relu(conv(h, params['c3w'], params['c3b'], 2, 1))
    cond = h.mean(axis=(2, 3))

    def gfm(x_in, cond, g):
        feat = jnp.einsum('nchw,oc->nohw', x_in, g['conv_w']) \
            + g['conv_b'][None, :, None, None]
        scale = cond @ g['scale_w'].T + g['scale_b']
        shift = cond @ g['shift_w'].T + g['shift_b']
        out = feat * scale[:, :, None, None] + shift[:, :, None, None] + feat
        return jax.nn.relu(out)

    o = gfm(x, cond, params['gfm1'])
    o = gfm(o, cond, params['gfm2'])
    o = gfm(o, cond, params['gfm3'])
    return o


# ----------------------------- main ------------------------------------------

if __name__ == "__main__":
    key = jax.random.PRNGKey(0)
    kx, kp = jax.random.split(key)
    x = jax.random.normal(kx, (2, 3, 16, 16), jnp.float32)   # NCHW, like PyTorch
    params = init_params(kp)

    out = csrnet_forward(x, params)
    out = jax.block_until_ready(out)

    ref = csrnet_reference(x, params)
    assert out.shape == ref.shape == (2, 3, 16, 16), (out.shape, ref.shape)
    assert jnp.allclose(out, ref, atol=1e-4, rtol=1e-4), \
        float(jnp.abs(out - ref).max())

    print("KERNEL_OK")
</pallas_src>

<mosaic_0001>
module attributes {stable_mosaic.version = 11 : i64} {
  func.func @_conv_relu_kernel(%arg0: i32, %arg1: memref<32x147xf32, #tpu.memory_space<vmem>>, %arg2: memref<147x128xf32, #tpu.memory_space<vmem>>, %arg3: memref<32x1xf32, #tpu.memory_space<vmem>>, %arg4: memref<32x128xf32, #tpu.memory_space<vmem>>) attributes {dimension_semantics = [#tpu.dimension_semantics<parallel>], iteration_bounds = array<i64: 1>, scalar_prefetch = 0 : i64, scratch_operands = 0 : i64, tpu.core_type = #tpu.core_type<tc>, window_params = [{pipeline_mode = #tpu.pipeline_mode<synchronous>, transform_indices = @transform_0, window_bounds = array<i64: 32, 147>}, {transform_indices = @transform_1, window_bounds = array<i64: 147, 128>}, {pipeline_mode = #tpu.pipeline_mode<synchronous>, transform_indices = @transform_2, window_bounds = array<i64: 32, 1>}, {transform_indices = @transform_3, window_bounds = array<i64: 32, 128>}]} {
    %c0 = arith.constant 0 : index
    %c0_0 = arith.constant 0 : index
    %0 = vector.load %arg1[%c0, %c0_0] : memref<32x147xf32, #tpu.memory_space<vmem>>, vector<32x147xf32>
    %c0_1 = arith.constant 0 : index
    %c0_2 = arith.constant 0 : index
    %1 = vector.load %arg2[%c0_1, %c0_2] : memref<147x128xf32, #tpu.memory_space<vmem>>, vector<147x128xf32>
    %cst = arith.constant dense<0.000000e+00> : vector<32x128xf32>
    %2 = tpu.matmul %0, %1, %cst {dimension_numbers = #tpu.dot_dimension_numbers<[1], [0], [0], [1], [0, 0, 1, 1], [], []>} : vector<32x147xf32>, vector<147x128xf32>, vector<32x128xf32> -> vector<32x128xf32>
    %c0_3 = arith.constant 0 : index
    %c0_4 = arith.constant 0 : index
    %3 = vector.load %arg3[%c0_3, %c0_4] : memref<32x1xf32, #tpu.memory_space<vmem>>, vector<32x1xf32>
    %4 = vector.broadcast %3 : vector<32x1xf32> to vector<32x128xf32>
    %5 = arith.addf %2, %4 : vector<32x128xf32>
    %cst_5 = arith.constant 0.000000e+00 : f32
    %6 = vector.broadcast %cst_5 : f32 to vector<32x128xf32>
    %7 = arith.maximumf %5, %6 : vector<32x128xf32>
    %c0_6 = arith.constant 0 : index
    %c0_7 = arith.constant 0 : index
    %8 = vector.load %arg4[%c0_6, %c0_7] : memref<32x128xf32, #tpu.memory_space<vmem>>, vector<32x128xf32>
    tpu.vector_store %arg4[%c0_6, %c0_7], %7 {strides = array<i32>} : memref<32x128xf32, #tpu.memory_space<vmem>>, vector<32x128xf32>,
    return
  }
  func.func @transform_0(%arg0: i32) -> (i32, i32) {
    %c0_i32 = arith.constant 0 : i32
    %c0_i32_0 = arith.constant 0 : i32
    %c0_i32_1 = arith.constant 0 : i32
    return %c0_i32, %c0_i32_0 : i32, i32
  }
  func.func @transform_1(%arg0: i32) -> (i32, i32) {
    %c0_i32 = arith.constant 0 : i32
    %c0_i32_0 = arith.constant 0 : i32
    return %c0_i32, %arg0 : i32, i32
  }
  func.func @transform_2(%arg0: i32) -> (i32, i32) {
    %c0_i32 = arith.constant 0 : i32
    %c0_i32_0 = arith.constant 0 : i32
    %c0_i32_1 = arith.constant 0 : i32
    return %c0_i32, %c0_i32_0 : i32, i32
  }
  func.func @transform_3(%arg0: i32) -> (i32, i32) {
    %c0_i32 = arith.constant 0 : i32
    %c0_i32_0 = arith.constant 0 : i32
    return %c0_i32, %arg0 : i32, i32
  }
}

</mosaic_0001>

<bundles_post_ra>
// kernel: tpu_custom_call.1
= control target key start
LH: loop header
LB: loop body
LE: loop exit
PB: predicated region body
PF: predicated region fallthrough
CT: control target
= control target key end

     0   :  { %8 = vsyncpa [#allocation3], 0  ;;  %s464_s0 = inlined_call_operand.hbm [shape: f32[32,147], index: 0, kind: input, shape index: {}]   ;;  %s465_s1 = inlined_call_operand.hbm [shape: f32[147,128], index: 1, kind: input, shape index: {}]   ;;  %s466_s2 = inlined_call_operand.vmem [shape: f32[32,1], index: 2, kind: input, shape index: {}]   ;;  %s467_s3 = inlined_call_operand.hbm [shape: f32[32,128], index: 3, kind: output, shape index: {}]  }
   0x1   :  { %9 = vsyncpa [#allocation6], 0 }
   0x2   :  { %10 = vsyncpa [#allocation4], 0  ;;  %s358_s12 = smov [#allocation2]   ;;  %s286_s16 = scalar_lea.hbm %s464_s0, 1024 }
   0x3   :  { %s16_s13 = sshll.u32 %s358_s12, 4  ;;  %p287_p0 = scmp.ne.s32.totalorder %s464_s0, %s286_s16  ;;  %s17_s13 = int_to_ptr.vmem [resolvable:$true] %s16_s13 }
   0x4   :  { %p290_p1 = scmp.lt.u32.totalorder %s286_s16, %s464_s0 }
   0x6   :  { %p292_p2 = pnand %p290_p1, %p287_p0 }
   0x8   :  { %295 = shalt.err (!%p292_p2)
}
   0x9   :  { %s296_s21 = scalar_lea.vmem %s17_s13, 1024  ;;  %p301_p4 = scmp.lt.s32.totalorder %s17_s13, %s17_s13 }
   0xa   :  { %p297_p3 = scmp.ne.s32.totalorder %s17_s13, %s296_s21  ;;  %p302_p5 = scmp.lt.s32.totalorder %s296_s21, %s296_s21 }
   0xc   :  { %p303_p6 = por %p302_p5, %p301_p4 }
   0xe   :  { %p304_p7 = pnand %p303_p6, %p297_p3 }
  0x10   :  { %307 = shalt.err (!%p304_p7)
}
  0x11   :  { %s359_s22 = smov 256   ;;  %s360_s23 = smov 16  }
  0x12   :  { %22 = dma.hbm_to_vmem [thread:$0]  %s464_s0, 1024, %s17_s13, [#allocation3], %s359_s22, %s359_s22, %s360_s23  }
  0x13   :  { %s361_s26 = smov [#allocation5]   ;;  %s308_s30 = scalar_lea.hbm %s465_s1, 2432 }
  0x14   :  { %s28_s27 = sshll.u32 %s361_s26, 4  ;;  %p309_p8 = scmp.ne.s32.totalorder %s465_s1, %s308_s30  ;;  %s29_s27 = int_to_ptr.vmem [resolvable:$true] %s28_s27 }
  0x15   :  { %p312_p9 = scmp.lt.u32.totalorder %s308_s30, %s465_s1 }
  0x17   :  { %p314_p10 = pnand %p312_p9, %p309_p8 }
  0x19   :  { %317 = shalt.err (!%p314_p10)
}
  0x1a   :  { %s318_s8 = scalar_lea.vmem %s29_s27, 2432  ;;  %p323_p12 = scmp.lt.s32.totalorder %s29_s27, %s29_s27 }
  0x1b   :  { %p319_p11 = scmp.ne.s32.totalorder %s29_s27, %s318_s8  ;;  %p324_p13 = scmp.lt.s32.totalorder %s318_s8, %s318_s8 }
  0x1d   :  { %p325_p0 = por %p324_p13, %p323_p12 }
  0x1f   :  { %p326_p1 = pnand %p325_p0, %p319_p11 }
  0x21   :  { %329 = shalt.err (!%p326_p1)
}
  0x22   :  { %s362_s0 = smov 128   ;;  %s363_s9 = smov 8  }
  0x23   :  { %34 = dma.hbm_to_vmem [thread:$0]  %s465_s1, 2432, %s29_s27, [#allocation6], %s362_s0, %s362_s0, %s363_s9  }
  0x24   :  { %352 = dma.done.wait [#allocation3], 1024  }
  0x25   :  { %353 = vsyncadd [#allocation3], 4294966272 }
  0x26   :  { %354 = dma.done.wait [#allocation6], 2432  }
  0x27   :  { %355 = vsyncadd [#allocation6], 4294964864  ;;  %v364_v0 = vmov 0.0|0.0   ;;  %v365_v1 = vmov 0   ;;  %v51_v2 = vld [vmem:[#allocation5] sm:$0xff]  ;;  %v52_v3 = vld [vmem:[#allocation5 + $0x8] sm:$0xff] }
  0x28   :  { %227 = vmatprep.subr.bf16.mxu0 %v364_v0  ;;  %254 = vmatprep.subr.bf16.mxu1 %v364_v0  ;;  %v53_v4 = vld [vmem:[#allocation5 + $0x10] sm:$0xff]  ;;  %v228_v5 = vpack.c.bf16 %v52_v3, %v51_v2  ;;  %v54_v6 = vld [vmem:[#allocation5 + $0x18] sm:$0xff]  ;;  %v55_v8 = vld [vmem:[#allocation5 + $0x20] sm:$0xff]  ;;  %vm94_vm0 = vcmask 154624   ;;  %v366_v35 = vmov 0.0   ;;  %vm107_vm1 = vcmask 1042432  }
  0x29   :  { %285 = vset.pattern.permute.xlu1 %v365_v1  ;;  %284 = vset.pattern.permute.xlu0 %v365_v1  ;;  %v231_v7 = vpack.c.bf16 %v54_v6, %v53_v4  ;;  %v56_v9 = vld [vmem:[#allocation5 + $0x28] sm:$0xff]  ;;  %v57_v13 = vld [vmem:[#allocation5 + $0x30] sm:$0xff]  ;;  %v58_v14 = vld [vmem:[#allocation5 + $0x38] sm:$0xff] }
  0x2a   :  { %229 = vmatpush1.bf16.msra.mxu0 %v228_v5  ;;  %264 = vmatpush1.bf16.msra.mxu1 %v228_v5  ;;  %v44_v10 = vld [vmem:[#allocation2 + $0x8] sm:$0xff]  ;;  %v234_v12 = vpack.c.bf16 %v56_v9, %v55_v8  ;;  %v72_v15 = vld [vmem:[%s466_s2 + $0x10] sm:$0xff]  ;;  %v70_v16 = vld [vmem:[%s466_s2] sm:$0xff]  ;;  %v237_v17 = vpack.c.bf16 %v58_v14, %v57_v13 }
  0x2b   :  { %230 = vmatprep.subr.bf16.mxu0 %v364_v0  ;;  %255 = vmatprep.subr.bf16.mxu1 %v364_v0  ;;  %v48_v11 = vld [vmem:[#allocation2 + $0x28] sm:$0xff]  ;;  %v73_v18 = vld [vmem:[%s466_s2 + $0x18] sm:$0xff]  ;;  %v59_v20 = vld [vmem:[#allocation5 + $0x40] sm:$0xff] }
  0x2c   :  { %223 = vmatprep.mubr.msk.f32.mxu0 %vm94_vm0, %v44_v10  ;;  %225 = vmatprep.mubr.msk.f32.mxu1 %vm94_vm0, %v48_v11  ;;  %v71_v19 = vld [vmem:[%s466_s2 + $0x8] sm:$0xff]  ;;  %v61_v23 = vld [vmem:[#allocation5 + $0x50] sm:$0xff]  ;;  %v62_v24 = vld [vmem:[#allocation5 + $0x58] sm:$0xff]  ;;  %s367_s2 = smov [#allocation7]  }
  0x2d   :  { %86 = vperm.xlu1 %285, %v72_v15   ;;  %76 = vperm.xlu0 %284, %v70_v16   ;;  %v60_v21 = vld [vmem:[#allocation5 + $0x48] sm:$0xff]  ;;  %v243_v25 = vpack.c.bf16 %v62_v24, %v61_v23  ;;  %v63_v26 = vld [vmem:[#allocation5 + $0x60] sm:$0xff]  ;;  %v65_v29 = vld [vmem:[#allocation5 + $0x70] sm:$0xff]  ;;  %s209_s19 = sshll.u32 %s367_s2, 4  ;;  %s210_s19 = int_to_ptr.vmem [resolvable:$true] %s209_s19 }
  0x2e   :  { %232 = vmatpush1.bf16.msra.mxu0 %v231_v7  ;;  %265 = vmatpush1.bf16.msra.mxu1 %v231_v7  ;;  %v240_v22 = vpack.c.bf16 %v60_v21, %v59_v20  ;;  %v64_v27 = vld [vmem:[#allocation5 + $0x68] sm:$0xff]  ;;  %v66_v30 = vld [vmem:[#allocation5 + $0x78] sm:$0xff]  ;;  %v67_v32 = vld [vmem:[#allocation5 + $0x80] sm:$0xff]  ;;  %s330_s20 = scalar_lea.vmem %s210_s19, 512  ;;  %p335_p3 = scmp.lt.s32.totalorder %s210_s19, %s210_s19 }
  0x2f   :  { %233 = vmatprep.subr.bf16.mxu0 %v364_v0  ;;  %256 = vmatprep.subr.bf16.mxu1 %v364_v0  ;;  %v246_v28 = vpack.c.bf16 %v64_v27, %v63_v26  ;;  %v249_v31 = vpack.c.bf16 %v66_v30, %v65_v29  ;;  %v68_v33 = vld [vmem:[#allocation5 + $0x88] sm:$0xff]  ;;  %v69_v36 = vld [vmem:[#allocation5 + $0x90] sm:$0x7]  ;;  %v43_v37 = vld [vmem:[#allocation2] sm:$0xff]  ;;  %p331_p2 = scmp.ne.s32.totalorder %s210_s19, %s330_s20  ;;  %p336_p4 = scmp.lt.s32.totalorder %s330_s20, %s330_s20 }
  0x30   :  { %v252_v34 = vpack.c.bf16 %v68_v33, %v67_v32  ;;  %v47_v38 = vld [vmem:[#allocation2 + $0x20] sm:$0xff]  ;;  %v46_v39 = vld [vmem:[#allocation2 + $0x18] sm:$0xff]  ;;  %v45_v41 = vld [vmem:[#allocation2 + $0x10] sm:$0xff] }
  0x31   :  { %91 = vperm.xlu1 %285, %v73_v18   ;;  %81 = vperm.xlu0 %284, %v71_v19   ;;  %v50_v40 = vld [vmem:[#allocation2 + $0x38] sm:$0xff]  ;;  %v49_v42 = vld [vmem:[#allocation2 + $0x30] sm:$0xff]  ;;  %p337_p5 = por %p336_p4, %p335_p3 }
  0x32   :  { %235 = vmatpush1.bf16.msra.mxu0 %v234_v12  ;;  %266 = vmatpush1.bf16.msra.mxu1 %v234_v12 }
  0x33   :  { %236 = vmatprep.subr.bf16.mxu0 %v364_v0  ;;  %257 = vmatprep.subr.bf16.mxu1 %v364_v0  ;;  %p338_p6 = pnand %p337_p5, %p331_p2 }
  0x36   :  { %238 = vmatpush1.bf16.msra.mxu0 %v237_v17  ;;  %267 = vmatpush1.bf16.msra.mxu1 %v237_v17 }
  0x37   :  { %239 = vmatprep.subr.bf16.mxu0 %v364_v0  ;;  %258 = vmatprep.subr.bf16.mxu1 %v364_v0 }
  0x3a   :  { %241 = vmatpush1.bf16.msra.mxu0 %v240_v22  ;;  %268 = vmatpush1.bf16.msra.mxu1 %v240_v22 }
  0x3b   :  { %242 = vmatprep.subr.bf16.mxu0 %v364_v0  ;;  %259 = vmatprep.subr.bf16.mxu1 %v364_v0 }
  0x3e   :  { %244 = vmatpush1.bf16.msra.mxu0 %v243_v25  ;;  %269 = vmatpush1.bf16.msra.mxu1 %v243_v25 }
  0x3f   :  { %245 = vmatprep.subr.bf16.mxu0 %v364_v0  ;;  %260 = vmatprep.subr.bf16.mxu1 %v364_v0 }
  0x42   :  { %247 = vmatpush1.bf16.msra.mxu0 %v246_v28  ;;  %270 = vmatpush1.bf16.msra.mxu1 %v246_v28 }
  0x43   :  { %248 = vmatprep.subr.bf16.mxu0 %v364_v0  ;;  %261 = vmatprep.subr.bf16.mxu1 %v364_v0 }
  0x46   :  { %250 = vmatpush1.bf16.msra.mxu0 %v249_v31  ;;  %271 = vmatpush1.bf16.msra.mxu1 %v249_v31 }
  0x47   :  { %251 = vmatprep.subr.bf16.mxu0 %v364_v0  ;;  %262 = vmatprep.subr.bf16.mxu1 %v364_v0 }
  0x4a   :  { %253 = vmatpush1.bf16.msra.mxu0 %v252_v34  ;;  %272 = vmatpush1.bf16.msra.mxu1 %v252_v34 }
  0x4b   :  { %147 = vmatprep.subr.mxu0 %v366_v35  ;;  %263 = vmatprep.subr.mxu1 %v366_v35 }
  0x4e   :  { %222 = vmatpush1.msk.msra.mxu0 %vm107_vm1, %v69_v36  ;;  %273 = vmatpush1.msk.msra.mxu1 %vm107_vm1, %v69_v36 }
  0x4f   :  { %176 = vmatmul.mubr.f32.vlgmr.msra.gmra.mrb[0].mxu0 %v43_v37  ;;  %186 = vmatmul.mubr.f32.vlgmr.msra.gmra.mrb[0].mxu1 %v47_v38 }
  0x50   :  { %224 = vmatprep.mubr.msk.f32.mxu0 %vm94_vm0, %v46_v39  ;;  %226 = vmatprep.mubr.msk.f32.mxu1 %vm94_vm0, %v50_v40 }
  0x53   :  { %181 = vmatmul.mubr.f32.gmra.mrb[2].mxu0 %v45_v41  ;;  %191 = vmatmul.mubr.f32.gmra.mrb[2].mxu1 %v49_v42 }
  0xac   :  { %v87_v43 = vpop.permute.xlu1 %86  ;;  %v77_v44 = vpop.permute.xlu0 %76 }
  0xb0   :  { %v92_v51 = vpop.permute.xlu1 %91  ;;  %v82_v52 = vpop.permute.xlu0 %81 }
 0x122   :  { %v177_v45 = vpop.f32.mrb[0].mxu0  ;;  %v187_v46 = vpop.f32.mrb[0].mxu1 }
 0x123   :  { %v178_v47 = vadd.f32 %v177_v45, %v77_v44  ;;  %v188_v48 = vadd.f32 %v187_v46, %v87_v43  ;;  %v179_v49 = vpop.f32.mrb[1].mxu0  ;;  %v189_v50 = vpop.f32.mrb[1].mxu1 }
 0x125   :  { %v196_v53 = vmax.f32 %v178_v47, 0.0  ;;  %v198_v54 = vmax.f32 %v188_v48, 0.0 }
 0x126   :  { %v182_v55 = vpop.f32.mrb[2].mxu0  ;;  %v192_v56 = vpop.f32.mrb[2].mxu1 }
 0x127   :  { %200 = vst [vmem:[#allocation7] sm:$0xff] %v196_v53  ;;  %202 = vst [vmem:[#allocation7 + $0x10] sm:$0xff] %v198_v54  ;;  %v183_v57 = vadd.f32 %v182_v55, %v82_v52  ;;  %v193_v58 = vadd.f32 %v192_v56, %v92_v51  ;;  %v184_v59 = vpop.f32.mrb[3].mxu0  ;;  %v194_v60 = vpop.f32.mrb[3].mxu1 }
 0x129   :  { %v197_v61 = vmax.f32 %v183_v57, 0.0  ;;  %v199_v62 = vmax.f32 %v193_v58, 0.0 }
 0x12b   :  { %201 = vst [vmem:[#allocation7 + $0x8] sm:$0xff] %v197_v61  ;;  %203 = vst [vmem:[#allocation7 + $0x18] sm:$0xff] %v199_v62 }
 0x12c   :  { %341 = shalt.err (!%p338_p6)
}
 0x12d   :  { %s342_s23 = scalar_lea.hbm %s467_s3, 512 }
 0x12e   :  { %p343_p7 = scmp.ne.s32.totalorder %s467_s3, %s342_s23  ;;  %p346_p8 = scmp.lt.u32.totalorder %s342_s23, %s467_s3 }
 0x130   :  { %p348_p9 = pnand %p346_p8, %p343_p7 }
 0x132   :  { %351 = shalt.err (!%p348_p9)
}
 0x133   :  { %215 = dma.vmem_to_hbm [thread:$0]  %s210_s19, 512, %s467_s3, [#allocation4], %s362_s0, %s362_s0, %s363_s9  }
 0x134   :  { %356 = dma.done.wait [#allocation4], 512  }
 0x135   :  { %357 = vsyncadd [#allocation4], 4294966784 }
 0x136   :  { %219 = vsyncpa [#allocation3], 1 }
 0x137   :  { %220 = vsyncpa [#allocation6], 1 }
 0x138   :  { %221 = vsyncpa [#allocation4], 1 }

</bundles_post_ra>
